<compile_context>
chip_gen: v7x
topology: tpu7x:2x2x1
jax: 0.10.0
libtpu: 0.0.40
codegen_flags: <defaults>
</compile_context>

<pallas_src>
import functools
from typing import NamedTuple

import jax
import jax.numpy as jnp
from jax.experimental import pallas as pl
from jax.experimental.pallas import tpu as pltpu


def _round_up(x, m):
    return ((x + m - 1) // m) * m


class NGramParams(NamedTuple):
    emb_expanded: jax.Array   # (C * vocab, in_dim_pad) lane-shifted embedding rows
    w1_pad: jax.Array         # (in_dim_pad, hidden)
    b1: jax.Array             # (1, hidden)
    w2_pad: jax.Array         # (hidden, vocab_pad)
    b2_pad: jax.Array         # (1, vocab_pad)
    vocab_size: int
    context_size: int
    embedding_dim: int
    hidden: int
    in_dim_pad: int
    vocab_pad: int


def prepare_params(emb_table, w1, b1, w2, b2):
    """One-time host-side re-layout of the (PyTorch-style) parameters."""
    vocab, D = emb_table.shape
    in_dim, hidden = w1.shape
    C = in_dim // D
    V = w2.shape[1]
    in_dim_pad = _round_up(in_dim, 128)
    vocab_pad = _round_up(V, 128)

    f32 = jnp.float32
    # Replicate the embedding table once per context slot, pre-shifted to the
    # lane range that slot occupies in the flattened (1, C*D) embedding.
    emb_expanded = jnp.zeros((C * vocab, in_dim_pad), f32)
    for c in range(C):
        emb_expanded = emb_expanded.at[c * vocab:(c + 1) * vocab,
                                       c * D:(c + 1) * D].set(emb_table.astype(f32))
    w1_pad = jnp.zeros((in_dim_pad, hidden), f32).at[:in_dim, :].set(w1.astype(f32))
    w2_pad = jnp.zeros((hidden, vocab_pad), f32).at[:, :V].set(w2.astype(f32))
    b2_pad = jnp.zeros((1, vocab_pad), f32).at[:, :V].set(b2.reshape(1, -1).astype(f32))
    b1 = b1.reshape(1, -1).astype(f32)
    return NGramParams(emb_expanded, w1_pad, b1, w2_pad, b2_pad,
                       vocab_size=V, context_size=C, embedding_dim=D,
                       hidden=hidden, in_dim_pad=in_dim_pad, vocab_pad=vocab_pad)


def _ngram_kernel(ids_ref, emb_ref, w1_ref, b1_ref, w2_ref, b2_ref, o_ref, x_ref,
                  *, context_size, vocab_rows, vocab_size, block_b):
    # ids_ref : SMEM (B_pad, C) int32 token ids (scalar-prefetched)
    # emb_ref : VMEM (C*vocab, in_dim_pad) lane-shifted embedding rows
    # w1_ref  : VMEM (in_dim_pad, H)   b1_ref : (1, H)
    # w2_ref  : VMEM (H, V_pad)        b2_ref : (1, V_pad)
    # o_ref   : VMEM (TB, V_pad)       x_ref  : VMEM scratch (TB, in_dim_pad)
    i = pl.program_id(0)

    # Fused embedding lookup. Because each context slot's embedding lives in a
    # disjoint lane range, the flattened `view(1, -1)` embedding of a context
    # is just the sum of its C pre-shifted table rows (full-width, aligned).
    for b in range(block_b):
        row = i * block_b + b
        acc = emb_ref[pl.ds(ids_ref[row, 0], 1), :]
        for c in range(1, context_size):
            acc = acc + emb_ref[pl.ds(c * vocab_rows + ids_ref[row, c], 1), :]
        x_ref[b:b + 1, :] = acc

    # linear1 + ReLU
    h = jnp.dot(x_ref[...], w1_ref[...],
                preferred_element_type=jnp.float32) + b1_ref[...]
    h = jnp.maximum(h, 0.0)
    # linear2
    logits = jnp.dot(h, w2_ref[...],
                     preferred_element_type=jnp.float32) + b2_ref[...]
    # Mask padded vocab lanes, then numerically stable log-softmax (dim=1).
    lane = jax.lax.broadcasted_iota(jnp.int32, logits.shape, dimension=1)
    logits = jnp.where(lane < vocab_size, logits, -jnp.inf)
    m = jnp.max(logits, axis=-1, keepdims=True)
    lse = m + jnp.log(jnp.sum(jnp.exp(logits - m), axis=-1, keepdims=True))
    o_ref[...] = (logits - lse).astype(o_ref.dtype)


def ngram_forward_pallas(inputs, params: NGramParams):
    """Forward pass.

    inputs: (C,) int32 ids  -> (1, vocab) log-probs (module semantics), or
            (B, C) int32 ids -> (B, vocab) log-probs (batched contexts).
    """
    C = params.context_size
    ids = jnp.asarray(inputs, jnp.int32)
    single = ids.ndim == 1
    ids2 = ids.reshape(1, C) if single else ids
    B = ids2.shape[0]

    # Batch tile: multiple of 8 sublanes, capped at 128 (MXU height on v5e).
    tb = min(_round_up(B, 8), 128)
    b_pad = _round_up(B, tb)
    ids_padded = jnp.zeros((b_pad, C), jnp.int32).at[:B, :].set(ids2)

    vocab_rows = params.emb_expanded.shape[0] // C
    in_dim_pad, hidden, v_pad = params.in_dim_pad, params.hidden, params.vocab_pad

    kernel = functools.partial(
        _ngram_kernel, context_size=C, vocab_rows=vocab_rows,
        vocab_size=params.vocab_size, block_b=tb)

    grid_spec = pltpu.PrefetchScalarGridSpec(
        num_scalar_prefetch=1,
        grid=(b_pad // tb,),
        in_specs=[
            pl.BlockSpec((C * vocab_rows, in_dim_pad), lambda i, ids: (0, 0)),
            pl.BlockSpec((in_dim_pad, hidden), lambda i, ids: (0, 0)),
            pl.BlockSpec((1, hidden), lambda i, ids: (0, 0)),
            pl.BlockSpec((hidden, v_pad), lambda i, ids: (0, 0)),
            pl.BlockSpec((1, v_pad), lambda i, ids: (0, 0)),
        ],
        out_specs=pl.BlockSpec((tb, v_pad), lambda i, ids: (i, 0)),
        scratch_shapes=[pltpu.VMEM((tb, in_dim_pad), jnp.float32)],
    )

    out = pl.pallas_call(
        kernel,
        out_shape=jax.ShapeDtypeStruct((b_pad, v_pad), jnp.float32),
        grid_spec=grid_spec,
        compiler_params=pltpu.CompilerParams(
            dimension_semantics=("parallel",)),  # shards batch tiles on v7x 2-TC
    )(ids_padded, params.emb_expanded, params.w1_pad, params.b1,
      params.w2_pad, params.b2_pad)

    # Drop batch padding and padded vocab lanes.
    return out[:B, :params.vocab_size]
    # TODO(synk): for realistic vocab sizes (>= ~8K) tile the vocab axis with a
    # streaming (two-pass/online) log-softmax instead of one full-vocab block.


def reference_forward(ids2d, emb_table, w1, b1, w2, b2):
    B = ids2d.shape[0]
    x = jnp.take(emb_table, ids2d.reshape(-1), axis=0).reshape(B, -1)
    h = jnp.maximum(x @ w1 + b1, 0.0)
    return jax.nn.log_softmax(h @ w2 + b2, axis=-1)


if __name__ == "__main__":
    # Small, deterministic setup consistent with the module's __init__.
    vocab_size = 16
    embedding_dimension = 10
    context_size = 4
    hidden = 128

    key = jax.random.PRNGKey(0)
    k_emb, k_w1, k_b1, k_w2, k_b2, k_in1, k_in2 = jax.random.split(key, 7)

    emb_table = jax.random.normal(k_emb, (vocab_size, embedding_dimension), jnp.float32)
    # PyTorch nn.Linear stores weight as (out, in); kept here as (in, out) for x @ W.
    w1 = jax.random.normal(k_w1, (context_size * embedding_dimension, hidden), jnp.float32) * 0.1
    b1 = jax.random.normal(k_b1, (1, hidden), jnp.float32) * 0.1
    w2 = jax.random.normal(k_w2, (hidden, vocab_size), jnp.float32) * 0.1
    b2 = jax.random.normal(k_b2, (1, vocab_size), jnp.float32) * 0.1

    params = prepare_params(emb_table, w1, b1, w2, b2)

    # 1) Module semantics: one context of `context_size` ids -> (1, vocab).
    inputs = jax.random.randint(k_in1, (context_size,), 0, vocab_size, jnp.int32)
    log_probs = jax.block_until_ready(ngram_forward_pallas(inputs, params))
    ref = reference_forward(inputs.reshape(1, -1), emb_table, w1, b1, w2, b2)
    assert log_probs.shape == (1, vocab_size)
    assert jnp.allclose(log_probs, ref, atol=1e-5, rtol=1e-5), "single-context mismatch"

    # 2) Batched contexts (fills MXU sublanes): (8, context_size) -> (8, vocab).
    batch_ids = jax.random.randint(k_in2, (8, context_size), 0, vocab_size, jnp.int32)
    log_probs_b = jax.block_until_ready(ngram_forward_pallas(batch_ids, params))
    ref_b = reference_forward(batch_ids, emb_table, w1, b1, w2, b2)
    assert log_probs_b.shape == (8, vocab_size)
    assert jnp.allclose(log_probs_b, ref_b, atol=1e-5, rtol=1e-5), "batched mismatch"

    print("KERNEL_OK")
</pallas_src>

<mosaic_0001>
module attributes {stable_mosaic.version = 11 : i64} {
  func.func @_ngram_kernel(%arg0: i32, %arg1: memref<8x4xi32, #tpu.memory_space<smem>>, %arg2: memref<64x128xf32, #tpu.memory_space<vmem>>, %arg3: memref<128x128xf32, #tpu.memory_space<vmem>>, %arg4: memref<1x128xf32, #tpu.memory_space<vmem>>, %arg5: memref<128x128xf32, #tpu.memory_space<vmem>>, %arg6: memref<1x128xf32, #tpu.memory_space<vmem>>, %arg7: memref<8x128xf32, #tpu.memory_space<vmem>>, %arg8: memref<8x128xf32, #tpu.memory_space<vmem>>) attributes {dimension_semantics = [#tpu.dimension_semantics<parallel>], iteration_bounds = array<i64: 1>, scalar_prefetch = 1 : i64, scratch_operands = 1 : i64, tpu.core_type = #tpu.core_type<tc>, window_params = [{pipeline_mode = #tpu.pipeline_mode<synchronous>, transform_indices = @transform_0, window_bounds = array<i64: 64, 128>}, {pipeline_mode = #tpu.pipeline_mode<synchronous>, transform_indices = @transform_1, window_bounds = array<i64: 128, 128>}, {pipeline_mode = #tpu.pipeline_mode<synchronous>, transform_indices = @transform_2, window_bounds = array<i64: 1, 128>}, {pipeline_mode = #tpu.pipeline_mode<synchronous>, transform_indices = @transform_3, window_bounds = array<i64: 128, 128>}, {pipeline_mode = #tpu.pipeline_mode<synchronous>, transform_indices = @transform_4, window_bounds = array<i64: 1, 128>}, {transform_indices = @transform_5, window_bounds = array<i64: 8, 128>}]} {
    %c8_i32 = arith.constant 8 : i32
    %0 = arith.muli %arg0, %c8_i32 : i32
    %c0_i32 = arith.constant 0 : i32
    %1 = arith.addi %0, %c0_i32 : i32
    %2 = arith.index_cast %1 : i32 to index
    %c0 = arith.constant 0 : index
    %3 = memref.load %arg1[%2, %c0] : memref<8x4xi32, #tpu.memory_space<smem>>
    %4 = arith.index_cast %3 : i32 to index
    %c0_0 = arith.constant 0 : index
    %5 = vector.load %arg2[%4, %c0_0] : memref<64x128xf32, #tpu.memory_space<vmem>>, vector<1x128xf32>
    %6 = arith.index_cast %1 : i32 to index
    %c1 = arith.constant 1 : index
    %7 = memref.load %arg1[%6, %c1] : memref<8x4xi32, #tpu.memory_space<smem>>
    %c16_i32 = arith.constant 16 : i32
    %8 = arith.addi %c16_i32, %7 : i32
    %9 = arith.index_cast %8 : i32 to index
    %c0_1 = arith.constant 0 : index
    %10 = vector.load %arg2[%9, %c0_1] : memref<64x128xf32, #tpu.memory_space<vmem>>, vector<1x128xf32>
    %11 = arith.addf %5, %10 : vector<1x128xf32>
    %12 = arith.index_cast %1 : i32 to index
    %c2 = arith.constant 2 : index
    %13 = memref.load %arg1[%12, %c2] : memref<8x4xi32, #tpu.memory_space<smem>>
    %c32_i32 = arith.constant 32 : i32
    %14 = arith.addi %c32_i32, %13 : i32
    %15 = arith.index_cast %14 : i32 to index
    %c0_2 = arith.constant 0 : index
    %16 = vector.load %arg2[%15, %c0_2] : memref<64x128xf32, #tpu.memory_space<vmem>>, vector<1x128xf32>
    %17 = arith.addf %11, %16 : vector<1x128xf32>
    %18 = arith.index_cast %1 : i32 to index
    %c3 = arith.constant 3 : index
    %19 = memref.load %arg1[%18, %c3] : memref<8x4xi32, #tpu.memory_space<smem>>
    %c48_i32 = arith.constant 48 : i32
    %20 = arith.addi %c48_i32, %19 : i32
    %21 = arith.index_cast %20 : i32 to index
    %c0_3 = arith.constant 0 : index
    %22 = vector.load %arg2[%21, %c0_3] : memref<64x128xf32, #tpu.memory_space<vmem>>, vector<1x128xf32>
    %23 = arith.addf %17, %22 : vector<1x128xf32>
    %c0_4 = arith.constant 0 : index
    %c0_5 = arith.constant 0 : index
    %24 = vector.load %arg8[%c0_4, %c0_5] : memref<8x128xf32, #tpu.memory_space<vmem>>, vector<1x128xf32>
    tpu.vector_store %arg8[%c0_4, %c0_5], %23 {strides = array<i32>} : memref<8x128xf32, #tpu.memory_space<vmem>>, vector<1x128xf32>,
    %c8_i32_6 = arith.constant 8 : i32
    %25 = arith.muli %arg0, %c8_i32_6 : i32
    %c1_i32 = arith.constant 1 : i32
    %26 = arith.addi %25, %c1_i32 : i32
    %27 = arith.index_cast %26 : i32 to index
    %c0_7 = arith.constant 0 : index
    %28 = memref.load %arg1[%27, %c0_7] : memref<8x4xi32, #tpu.memory_space<smem>>
    %29 = arith.index_cast %28 : i32 to index
    %c0_8 = arith.constant 0 : index
    %30 = vector.load %arg2[%29, %c0_8] : memref<64x128xf32, #tpu.memory_space<vmem>>, vector<1x128xf32>
    %31 = arith.index_cast %26 : i32 to index
    %c1_9 = arith.constant 1 : index
    %32 = memref.load %arg1[%31, %c1_9] : memref<8x4xi32, #tpu.memory_space<smem>>
    %c16_i32_10 = arith.constant 16 : i32
    %33 = arith.addi %c16_i32_10, %32 : i32
    %34 = arith.index_cast %33 : i32 to index
    %c0_11 = arith.constant 0 : index
    %35 = vector.load %arg2[%34, %c0_11] : memref<64x128xf32, #tpu.memory_space<vmem>>, vector<1x128xf32>
    %36 = arith.addf %30, %35 : vector<1x128xf32>
    %37 = arith.index_cast %26 : i32 to index
    %c2_12 = arith.constant 2 : index
    %38 = memref.load %arg1[%37, %c2_12] : memref<8x4xi32, #tpu.memory_space<smem>>
    %c32_i32_13 = arith.constant 32 : i32
    %39 = arith.addi %c32_i32_13, %38 : i32
    %40 = arith.index_cast %39 : i32 to index
    %c0_14 = arith.constant 0 : index
    %41 = vector.load %arg2[%40, %c0_14] : memref<64x128xf32, #tpu.memory_space<vmem>>, vector<1x128xf32>
    %42 = arith.addf %36, %41 : vector<1x128xf32>
    %43 = arith.index_cast %26 : i32 to index
    %c3_15 = arith.constant 3 : index
    %44 = memref.load %arg1[%43, %c3_15] : memref<8x4xi32, #tpu.memory_space<smem>>
    %c48_i32_16 = arith.constant 48 : i32
    %45 = arith.addi %c48_i32_16, %44 : i32
    %46 = arith.index_cast %45 : i32 to index
    %c0_17 = arith.constant 0 : index
    %47 = vector.load %arg2[%46, %c0_17] : memref<64x128xf32, #tpu.memory_space<vmem>>, vector<1x128xf32>
    %48 = arith.addf %42, %47 : vector<1x128xf32>
    %c1_18 = arith.constant 1 : index
    %c0_19 = arith.constant 0 : index
    %49 = vector.load %arg8[%c1_18, %c0_19] : memref<8x128xf32, #tpu.memory_space<vmem>>, vector<1x128xf32>
    tpu.vector_store %arg8[%c1_18, %c0_19], %48 {strides = array<i32>} : memref<8x128xf32, #tpu.memory_space<vmem>>, vector<1x128xf32>,
    %c8_i32_20 = arith.constant 8 : i32
    %50 = arith.muli %arg0, %c8_i32_20 : i32
    %c2_i32 = arith.constant 2 : i32
    %51 = arith.addi %50, %c2_i32 : i32
    %52 = arith.index_cast %51 : i32 to index
    %c0_21 = arith.constant 0 : index
    %53 = memref.load %arg1[%52, %c0_21] : memref<8x4xi32, #tpu.memory_space<smem>>
    %54 = arith.index_cast %53 : i32 to index
    %c0_22 = arith.constant 0 : index
    %55 = vector.load %arg2[%54, %c0_22] : memref<64x128xf32, #tpu.memory_space<vmem>>, vector<1x128xf32>
    %56 = arith.index_cast %51 : i32 to index
    %c1_23 = arith.constant 1 : index
    %57 = memref.load %arg1[%56, %c1_23] : memref<8x4xi32, #tpu.memory_space<smem>>
    %c16_i32_24 = arith.constant 16 : i32
    %58 = arith.addi %c16_i32_24, %57 : i32
    %59 = arith.index_cast %58 : i32 to index
    %c0_25 = arith.constant 0 : index
    %60 = vector.load %arg2[%59, %c0_25] : memref<64x128xf32, #tpu.memory_space<vmem>>, vector<1x128xf32>
    %61 = arith.addf %55, %60 : vector<1x128xf32>
    %62 = arith.index_cast %51 : i32 to index
    %c2_26 = arith.constant 2 : index
    %63 = memref.load %arg1[%62, %c2_26] : memref<8x4xi32, #tpu.memory_space<smem>>
    %c32_i32_27 = arith.constant 32 : i32
    %64 = arith.addi %c32_i32_27, %63 : i32
    %65 = arith.index_cast %64 : i32 to index
    %c0_28 = arith.constant 0 : index
    %66 = vector.load %arg2[%65, %c0_28] : memref<64x128xf32, #tpu.memory_space<vmem>>, vector<1x128xf32>
    %67 = arith.addf %61, %66 : vector<1x128xf32>
    %68 = arith.index_cast %51 : i32 to index
    %c3_29 = arith.constant 3 : index
    %69 = memref.load %arg1[%68, %c3_29] : memref<8x4xi32, #tpu.memory_space<smem>>
    %c48_i32_30 = arith.constant 48 : i32
    %70 = arith.addi %c48_i32_30, %69 : i32
    %71 = arith.index_cast %70 : i32 to index
    %c0_31 = arith.constant 0 : index
    %72 = vector.load %arg2[%71, %c0_31] : memref<64x128xf32, #tpu.memory_space<vmem>>, vector<1x128xf32>
    %73 = arith.addf %67, %72 : vector<1x128xf32>
    %c2_32 = arith.constant 2 : index
    %c0_33 = arith.constant 0 : index
    %74 = vector.load %arg8[%c2_32, %c0_33] : memref<8x128xf32, #tpu.memory_space<vmem>>, vector<1x128xf32>
    tpu.vector_store %arg8[%c2_32, %c0_33], %73 {strides = array<i32>} : memref<8x128xf32, #tpu.memory_space<vmem>>, vector<1x128xf32>,
    %c8_i32_34 = arith.constant 8 : i32
    %75 = arith.muli %arg0, %c8_i32_34 : i32
    %c3_i32 = arith.constant 3 : i32
    %76 = arith.addi %75, %c3_i32 : i32
    %77 = arith.index_cast %76 : i32 to index
    %c0_35 = arith.constant 0 : index
    %78 = memref.load %arg1[%77, %c0_35] : memref<8x4xi32, #tpu.memory_space<smem>>
    %79 = arith.index_cast %78 : i32 to index
    %c0_36 = arith.constant 0 : index
    %80 = vector.load %arg2[%79, %c0_36] : memref<64x128xf32, #tpu.memory_space<vmem>>, vector<1x128xf32>
    %81 = arith.index_cast %76 : i32 to index
    %c1_37 = arith.constant 1 : index
    %82 = memref.load %arg1[%81, %c1_37] : memref<8x4xi32, #tpu.memory_space<smem>>
    %c16_i32_38 = arith.constant 16 : i32
    %83 = arith.addi %c16_i32_38, %82 : i32
    %84 = arith.index_cast %83 : i32 to index
    %c0_39 = arith.constant 0 : index
    %85 = vector.load %arg2[%84, %c0_39] : memref<64x128xf32, #tpu.memory_space<vmem>>, vector<1x128xf32>
    %86 = arith.addf %80, %85 : vector<1x128xf32>
    %87 = arith.index_cast %76 : i32 to index
    %c2_40 = arith.constant 2 : index
    %88 = memref.load %arg1[%87, %c2_40] : memref<8x4xi32, #tpu.memory_space<smem>>
    %c32_i32_41 = arith.constant 32 : i32
    %89 = arith.addi %c32_i32_41, %88 : i32
    %90 = arith.index_cast %89 : i32 to index
    %c0_42 = arith.constant 0 : index
    %91 = vector.load %arg2[%90, %c0_42] : memref<64x128xf32, #tpu.memory_space<vmem>>, vector<1x128xf32>
    %92 = arith.addf %86, %91 : vector<1x128xf32>
    %93 = arith.index_cast %76 : i32 to index
    %c3_43 = arith.constant 3 : index
    %94 = memref.load %arg1[%93, %c3_43] : memref<8x4xi32, #tpu.memory_space<smem>>
    %c48_i32_44 = arith.constant 48 : i32
    %95 = arith.addi %c48_i32_44, %94 : i32
    %96 = arith.index_cast %95 : i32 to index
    %c0_45 = arith.constant 0 : index
    %97 = vector.load %arg2[%96, %c0_45] : memref<64x128xf32, #tpu.memory_space<vmem>>, vector<1x128xf32>
    %98 = arith.addf %92, %97 : vector<1x128xf32>
    %c3_46 = arith.constant 3 : index
    %c0_47 = arith.constant 0 : index
    %99 = vector.load %arg8[%c3_46, %c0_47] : memref<8x128xf32, #tpu.memory_space<vmem>>, vector<1x128xf32>
    tpu.vector_store %arg8[%c3_46, %c0_47], %98 {strides = array<i32>} : memref<8x128xf32, #tpu.memory_space<vmem>>, vector<1x128xf32>,
    %c8_i32_48 = arith.constant 8 : i32
    %100 = arith.muli %arg0, %c8_i32_48 : i32
    %c4_i32 = arith.constant 4 : i32
    %101 = arith.addi %100, %c4_i32 : i32
    %102 = arith.index_cast %101 : i32 to index
    %c0_49 = arith.constant 0 : index
    %103 = memref.load %arg1[%102, %c0_49] : memref<8x4xi32, #tpu.memory_space<smem>>
    %104 = arith.index_cast %103 : i32 to index
    %c0_50 = arith.constant 0 : index
    %105 = vector.load %arg2[%104, %c0_50] : memref<64x128xf32, #tpu.memory_space<vmem>>, vector<1x128xf32>
    %106 = arith.index_cast %101 : i32 to index
    %c1_51 = arith.constant 1 : index
    %107 = memref.load %arg1[%106, %c1_51] : memref<8x4xi32, #tpu.memory_space<smem>>
    %c16_i32_52 = arith.constant 16 : i32
    %108 = arith.addi %c16_i32_52, %107 : i32
    %109 = arith.index_cast %108 : i32 to index
    %c0_53 = arith.constant 0 : index
    %110 = vector.load %arg2[%109, %c0_53] : memref<64x128xf32, #tpu.memory_space<vmem>>, vector<1x128xf32>
    %111 = arith.addf %105, %110 : vector<1x128xf32>
    %112 = arith.index_cast %101 : i32 to index
    %c2_54 = arith.constant 2 : index
    %113 = memref.load %arg1[%112, %c2_54] : memref<8x4xi32, #tpu.memory_space<smem>>
    %c32_i32_55 = arith.constant 32 : i32
    %114 = arith.addi %c32_i32_55, %113 : i32
    %115 = arith.index_cast %114 : i32 to index
    %c0_56 = arith.constant 0 : index
    %116 = vector.load %arg2[%115, %c0_56] : memref<64x128xf32, #tpu.memory_space<vmem>>, vector<1x128xf32>
    %117 = arith.addf %111, %116 : vector<1x128xf32>
    %118 = arith.index_cast %101 : i32 to index
    %c3_57 = arith.constant 3 : index
    %119 = memref.load %arg1[%118, %c3_57] : memref<8x4xi32, #tpu.memory_space<smem>>
    %c48_i32_58 = arith.constant 48 : i32
    %120 = arith.addi %c48_i32_58, %119 : i32
    %121 = arith.index_cast %120 : i32 to index
    %c0_59 = arith.constant 0 : index
    %122 = vector.load %arg2[%121, %c0_59] : memref<64x128xf32, #tpu.memory_space<vmem>>, vector<1x128xf32>
    %123 = arith.addf %117, %122 : vector<1x128xf32>
    %c4 = arith.constant 4 : index
    %c0_60 = arith.constant 0 : index
    %124 = vector.load %arg8[%c4, %c0_60] : memref<8x128xf32, #tpu.memory_space<vmem>>, vector<1x128xf32>
    tpu.vector_store %arg8[%c4, %c0_60], %123 {strides = array<i32>} : memref<8x128xf32, #tpu.memory_space<vmem>>, vector<1x128xf32>,
    %c8_i32_61 = arith.constant 8 : i32
    %125 = arith.muli %arg0, %c8_i32_61 : i32
    %c5_i32 = arith.constant 5 : i32
    %126 = arith.addi %125, %c5_i32 : i32
    %127 = arith.index_cast %126 : i32 to index
    %c0_62 = arith.constant 0 : index
    %128 = memref.load %arg1[%127, %c0_62] : memref<8x4xi32, #tpu.memory_space<smem>>
    %129 = arith.index_cast %128 : i32 to index
    %c0_63 = arith.constant 0 : index
    %130 = vector.load %arg2[%129, %c0_63] : memref<64x128xf32, #tpu.memory_space<vmem>>, vector<1x128xf32>
    %131 = arith.index_cast %126 : i32 to index
    %c1_64 = arith.constant 1 : index
    %132 = memref.load %arg1[%131, %c1_64] : memref<8x4xi32, #tpu.memory_space<smem>>
    %c16_i32_65 = arith.constant 16 : i32
    %133 = arith.addi %c16_i32_65, %132 : i32
    %134 = arith.index_cast %133 : i32 to index
    %c0_66 = arith.constant 0 : index
    %135 = vector.load %arg2[%134, %c0_66] : memref<64x128xf32, #tpu.memory_space<vmem>>, vector<1x128xf32>
    %136 = arith.addf %130, %135 : vector<1x128xf32>
    %137 = arith.index_cast %126 : i32 to index
    %c2_67 = arith.constant 2 : index
    %138 = memref.load %arg1[%137, %c2_67] : memref<8x4xi32, #tpu.memory_space<smem>>
    %c32_i32_68 = arith.constant 32 : i32
    %139 = arith.addi %c32_i32_68, %138 : i32
    %140 = arith.index_cast %139 : i32 to index
    %c0_69 = arith.constant 0 : index
    %141 = vector.load %arg2[%140, %c0_69] : memref<64x128xf32, #tpu.memory_space<vmem>>, vector<1x128xf32>
    %142 = arith.addf %136, %141 : vector<1x128xf32>
    %143 = arith.index_cast %126 : i32 to index
    %c3_70 = arith.constant 3 : index
    %144 = memref.load %arg1[%143, %c3_70] : memref<8x4xi32, #tpu.memory_space<smem>>
    %c48_i32_71 = arith.constant 48 : i32
    %145 = arith.addi %c48_i32_71, %144 : i32
    %146 = arith.index_cast %145 : i32 to index
    %c0_72 = arith.constant 0 : index
    %147 = vector.load %arg2[%146, %c0_72] : memref<64x128xf32, #tpu.memory_space<vmem>>, vector<1x128xf32>
    %148 = arith.addf %142, %147 : vector<1x128xf32>
    %c5 = arith.constant 5 : index
    %c0_73 = arith.constant 0 : index
    %149 = vector.load %arg8[%c5, %c0_73] : memref<8x128xf32, #tpu.memory_space<vmem>>, vector<1x128xf32>
    tpu.vector_store %arg8[%c5, %c0_73], %148 {strides = array<i32>} : memref<8x128xf32, #tpu.memory_space<vmem>>, vector<1x128xf32>,
    %c8_i32_74 = arith.constant 8 : i32
    %150 = arith.muli %arg0, %c8_i32_74 : i32
    %c6_i32 = arith.constant 6 : i32
    %151 = arith.addi %150, %c6_i32 : i32
    %152 = arith.index_cast %151 : i32 to index
    %c0_75 = arith.constant 0 : index
    %153 = memref.load %arg1[%152, %c0_75] : memref<8x4xi32, #tpu.memory_space<smem>>
    %154 = arith.index_cast %153 : i32 to index
    %c0_76 = arith.constant 0 : index
    %155 = vector.load %arg2[%154, %c0_76] : memref<64x128xf32, #tpu.memory_space<vmem>>, vector<1x128xf32>
    %156 = arith.index_cast %151 : i32 to index
    %c1_77 = arith.constant 1 : index
    %157 = memref.load %arg1[%156, %c1_77] : memref<8x4xi32, #tpu.memory_space<smem>>
    %c16_i32_78 = arith.constant 16 : i32
    %158 = arith.addi %c16_i32_78, %157 : i32
    %159 = arith.index_cast %158 : i32 to index
    %c0_79 = arith.constant 0 : index
    %160 = vector.load %arg2[%159, %c0_79] : memref<64x128xf32, #tpu.memory_space<vmem>>, vector<1x128xf32>
    %161 = arith.addf %155, %160 : vector<1x128xf32>
    %162 = arith.index_cast %151 : i32 to index
    %c2_80 = arith.constant 2 : index
    %163 = memref.load %arg1[%162, %c2_80] : memref<8x4xi32, #tpu.memory_space<smem>>
    %c32_i32_81 = arith.constant 32 : i32
    %164 = arith.addi %c32_i32_81, %163 : i32
    %165 = arith.index_cast %164 : i32 to index
    %c0_82 = arith.constant 0 : index
    %166 = vector.load %arg2[%165, %c0_82] : memref<64x128xf32, #tpu.memory_space<vmem>>, vector<1x128xf32>
    %167 = arith.addf %161, %166 : vector<1x128xf32>
    %168 = arith.index_cast %151 : i32 to index
    %c3_83 = arith.constant 3 : index
    %169 = memref.load %arg1[%168, %c3_83] : memref<8x4xi32, #tpu.memory_space<smem>>
    %c48_i32_84 = arith.constant 48 : i32
    %170 = arith.addi %c48_i32_84, %169 : i32
    %171 = arith.index_cast %170 : i32 to index
    %c0_85 = arith.constant 0 : index
    %172 = vector.load %arg2[%171, %c0_85] : memref<64x128xf32, #tpu.memory_space<vmem>>, vector<1x128xf32>
    %173 = arith.addf %167, %172 : vector<1x128xf32>
    %c6 = arith.constant 6 : index
    %c0_86 = arith.constant 0 : index
    %174 = vector.load %arg8[%c6, %c0_86] : memref<8x128xf32, #tpu.memory_space<vmem>>, vector<1x128xf32>
    tpu.vector_store %arg8[%c6, %c0_86], %173 {strides = array<i32>} : memref<8x128xf32, #tpu.memory_space<vmem>>, vector<1x128xf32>,
    %c8_i32_87 = arith.constant 8 : i32
    %175 = arith.muli %arg0, %c8_i32_87 : i32
    %c7_i32 = arith.constant 7 : i32
    %176 = arith.addi %175, %c7_i32 : i32
    %177 = arith.index_cast %176 : i32 to index
    %c0_88 = arith.constant 0 : index
    %178 = memref.load %arg1[%177, %c0_88] : memref<8x4xi32, #tpu.memory_space<smem>>
    %179 = arith.index_cast %178 : i32 to index
    %c0_89 = arith.constant 0 : index
    %180 = vector.load %arg2[%179, %c0_89] : memref<64x128xf32, #tpu.memory_space<vmem>>, vector<1x128xf32>
    %181 = arith.index_cast %176 : i32 to index
    %c1_90 = arith.constant 1 : index
    %182 = memref.load %arg1[%181, %c1_90] : memref<8x4xi32, #tpu.memory_space<smem>>
    %c16_i32_91 = arith.constant 16 : i32
    %183 = arith.addi %c16_i32_91, %182 : i32
    %184 = arith.index_cast %183 : i32 to index
    %c0_92 = arith.constant 0 : index
    %185 = vector.load %arg2[%184, %c0_92] : memref<64x128xf32, #tpu.memory_space<vmem>>, vector<1x128xf32>
    %186 = arith.addf %180, %185 : vector<1x128xf32>
    %187 = arith.index_cast %176 : i32 to index
    %c2_93 = arith.constant 2 : index
    %188 = memref.load %arg1[%187, %c2_93] : memref<8x4xi32, #tpu.memory_space<smem>>
    %c32_i32_94 = arith.constant 32 : i32
    %189 = arith.addi %c32_i32_94, %188 : i32
    %190 = arith.index_cast %189 : i32 to index
    %c0_95 = arith.constant 0 : index
    %191 = vector.load %arg2[%190, %c0_95] : memref<64x128xf32, #tpu.memory_space<vmem>>, vector<1x128xf32>
    %192 = arith.addf %186, %191 : vector<1x128xf32>
    %193 = arith.index_cast %176 : i32 to index
    %c3_96 = arith.constant 3 : index
    %194 = memref.load %arg1[%193, %c3_96] : memref<8x4xi32, #tpu.memory_space<smem>>
    %c48_i32_97 = arith.constant 48 : i32
    %195 = arith.addi %c48_i32_97, %194 : i32
    %196 = arith.index_cast %195 : i32 to index
    %c0_98 = arith.constant 0 : index
    %197 = vector.load %arg2[%196, %c0_98] : memref<64x128xf32, #tpu.memory_space<vmem>>, vector<1x128xf32>
    %198 = arith.addf %192, %197 : vector<1x128xf32>
    %c7 = arith.constant 7 : index
    %c0_99 = arith.constant 0 : index
    %199 = vector.load %arg8[%c7, %c0_99] : memref<8x128xf32, #tpu.memory_space<vmem>>, vector<1x128xf32>
    tpu.vector_store %arg8[%c7, %c0_99], %198 {strides = array<i32>} : memref<8x128xf32, #tpu.memory_space<vmem>>, vector<1x128xf32>,
    %c0_100 = arith.constant 0 : index
    %c0_101 = arith.constant 0 : index
    %200 = vector.load %arg8[%c0_100, %c0_101] : memref<8x128xf32, #tpu.memory_space<vmem>>, vector<8x128xf32>
    %c0_102 = arith.constant 0 : index
    %c0_103 = arith.constant 0 : index
    %201 = vector.load %arg3[%c0_102, %c0_103] : memref<128x128xf32, #tpu.memory_space<vmem>>, vector<128x128xf32>
    %cst = arith.constant dense<0.000000e+00> : vector<8x128xf32>
    %202 = tpu.matmul %200, %201, %cst {dimension_numbers = #tpu.dot_dimension_numbers<[1], [0], [0], [1], [0, 0, 1, 1], [], []>} : vector<8x128xf32>, vector<128x128xf32>, vector<8x128xf32> -> vector<8x128xf32>
    %c0_104 = arith.constant 0 : index
    %c0_105 = arith.constant 0 : index
    %203 = vector.load %arg4[%c0_104, %c0_105] : memref<1x128xf32, #tpu.memory_space<vmem>>, vector<1x128xf32>
    %204 = vector.broadcast %203 : vector<1x128xf32> to vector<8x128xf32>
    %205 = arith.addf %202, %204 : vector<8x128xf32>
    %cst_106 = arith.constant 0.000000e+00 : f32
    %206 = vector.broadcast %cst_106 : f32 to vector<8x128xf32>
    %207 = arith.maximumf %205, %206 : vector<8x128xf32>
    %c0_107 = arith.constant 0 : index
    %c0_108 = arith.constant 0 : index
    %208 = vector.load %arg5[%c0_107, %c0_108] : memref<128x128xf32, #tpu.memory_space<vmem>>, vector<128x128xf32>
    %cst_109 = arith.constant dense<0.000000e+00> : vector<8x128xf32>
    %209 = tpu.matmul %207, %208, %cst_109 {dimension_numbers = #tpu.dot_dimension_numbers<[1], [0], [0], [1], [0, 0, 1, 1], [], []>} : vector<8x128xf32>, vector<128x128xf32>, vector<8x128xf32> -> vector<8x128xf32>
    %c0_110 = arith.constant 0 : index
    %c0_111 = arith.constant 0 : index
    %210 = vector.load %arg6[%c0_110, %c0_111] : memref<1x128xf32, #tpu.memory_space<vmem>>, vector<1x128xf32>
    %211 = vector.broadcast %210 : vector<1x128xf32> to vector<8x128xf32>
    %212 = arith.addf %209, %211 : vector<8x128xf32>
    %213 = tpu.iota {dimensions = array<i32: 1>} : vector<8x128xi32>
    %c16_i32_112 = arith.constant 16 : i32
    %214 = vector.broadcast %c16_i32_112 : i32 to vector<8x128xi32>
    %215 = arith.cmpi slt, %213, %214 : vector<8x128xi32>
    %cst_113 = arith.constant 0xFF800000 : f32
    %216 = vector.broadcast %cst_113 : f32 to vector<8x128xf32>
    %217 = arith.select %215, %212, %216 : vector<8x128xi1>, vector<8x128xf32>
    %cst_114 = arith.constant dense<0xFF800000> : vector<8xf32>
    %218 = vector.multi_reduction <maximumf>, %217, %cst_114 [1] : vector<8x128xf32> to vector<8xf32>
    %219 = vector.shape_cast %218 : vector<8xf32> to vector<8x1xf32>
    %220 = vector.broadcast %219 : vector<8x1xf32> to vector<8x128xf32>
    %221 = arith.subf %217, %220 : vector<8x128xf32>
    %222 = math.exp %221 : vector<8x128xf32>
    %cst_115 = arith.constant dense<0.000000e+00> : vector<8xf32>
    %223 = vector.multi_reduction <add>, %222, %cst_115 [1] : vector<8x128xf32> to vector<8xf32>
    %224 = vector.shape_cast %223 : vector<8xf32> to vector<8x1xf32>
    %225 = math.log %224 : vector<8x1xf32>
    %226 = arith.addf %219, %225 : vector<8x1xf32>
    %227 = vector.broadcast %226 : vector<8x1xf32> to vector<8x128xf32>
    %228 = arith.subf %217, %227 : vector<8x128xf32>
    %c0_116 = arith.constant 0 : index
    %c0_117 = arith.constant 0 : index
    %229 = vector.load %arg7[%c0_116, %c0_117] : memref<8x128xf32, #tpu.memory_space<vmem>>, vector<8x128xf32>
    tpu.vector_store %arg7[%c0_116, %c0_117], %228 {strides = array<i32>} : memref<8x128xf32, #tpu.memory_space<vmem>>, vector<8x128xf32>,
    return
  }
  func.func @transform_0(%arg0: i32, %arg1: memref<8x4xi32, #tpu.memory_space<smem>>) -> (i32, i32) {
    %c0_i32 = arith.constant 0 : i32
    %c0_i32_0 = arith.constant 0 : i32
    %c0_i32_1 = arith.constant 0 : i32
    return %c0_i32, %c0_i32_0 : i32, i32
  }
  func.func @transform_1(%arg0: i32, %arg1: memref<8x4xi32, #tpu.memory_space<smem>>) -> (i32, i32) {
    %c0_i32 = arith.constant 0 : i32
    %c0_i32_0 = arith.constant 0 : i32
    %c0_i32_1 = arith.constant 0 : i32
    return %c0_i32, %c0_i32_0 : i32, i32
  }
  func.func @transform_2(%arg0: i32, %arg1: memref<8x4xi32, #tpu.memory_space<smem>>) -> (i32, i32) {
    %c0_i32 = arith.constant 0 : i32
    %c0_i32_0 = arith.constant 0 : i32
    %c0_i32_1 = arith.constant 0 : i32
    return %c0_i32, %c0_i32_0 : i32, i32
  }
  func.func @transform_3(%arg0: i32, %arg1: memref<8x4xi32, #tpu.memory_space<smem>>) -> (i32, i32) {
    %c0_i32 = arith.constant 0 : i32
    %c0_i32_0 = arith.constant 0 : i32
    %c0_i32_1 = arith.constant 0 : i32
    return %c0_i32, %c0_i32_0 : i32, i32
  }
  func.func @transform_4(%arg0: i32, %arg1: memref<8x4xi32, #tpu.memory_space<smem>>) -> (i32, i32) {
    %c0_i32 = arith.constant 0 : i32
    %c0_i32_0 = arith.constant 0 : i32
    %c0_i32_1 = arith.constant 0 : i32
    return %c0_i32, %c0_i32_0 : i32, i32
  }
  func.func @transform_5(%arg0: i32, %arg1: memref<8x4xi32, #tpu.memory_space<smem>>) -> (i32, i32) {
    %c0_i32 = arith.constant 0 : i32
    %c0_i32_0 = arith.constant 0 : i32
    return %arg0, %c0_i32 : i32, i32
  }
}

</mosaic_0001>

<bundles_post_ra>
// kernel: tpu_custom_call.1
= control target key start
LH: loop header
LB: loop body
LE: loop exit
PB: predicated region body
PF: predicated region fallthrough
CT: control target
= control target key end

     0   :  { %s1092_s0 = inlined_call_operand.vmem [shape: s32[8,4], index: 0, kind: input, shape index: {}]   ;;  %s1093_s1 = inlined_call_operand.hbm [shape: f32[64,128], index: 1, kind: input, shape index: {}]   ;;  %s1094_s2 = inlined_call_operand.hbm [shape: f32[128,128], index: 2, kind: input, shape index: {}]   ;;  %s1095_s3 = inlined_call_operand.vmem [shape: f32[1,128], index: 3, kind: input, shape index: {}]   ;;  %s1096_s4 = inlined_call_operand.hbm [shape: f32[128,128], index: 4, kind: input, shape index: {}]   ;;  %s1097_s5 = inlined_call_operand.vmem [shape: f32[1,128], index: 5, kind: input, shape index: {}]   ;;  %s1098_s6 = inlined_call_operand.hbm [shape: f32[8,128], index: 6, kind: output, shape index: {}]  }
   0x1   :  { %s11_s23 = sshll.u32 %s1092_s0, 4  ;;  %s12_s23 = int_to_ptr.vmem [resolvable:$true] %s11_s23 }
   0x2   :  { %s760_s24 = scalar_lea.vmem %s12_s23, 128  ;;  %p765_p1 = scmp.lt.s32.totalorder %s12_s23, %s12_s23 }
   0x3   :  { %p761_p0 = scmp.ne.s32.totalorder %s12_s23, %s760_s24  ;;  %p766_p2 = scmp.lt.s32.totalorder %s760_s24, %s760_s24 }
   0x5   :  { %p767_p3 = por %p766_p2, %p765_p1 }
   0x7   :  { %p768_p4 = pnand %p767_p3, %p761_p0 }
   0x9   :  { %771 = shalt.err (!%p768_p4)  }
   0xa   :  { %s868_s25 = smov [#allocation4]  }
   0xb   :  { %14 = dma.vmem_to_smem %s12_s23, 128, %s868_s25, [#allocation3] }
   0xc   :  { %860 = dma.done.wait [#allocation3], 128 }
   0xd   :  { %861 = vsyncadd [#allocation3], 4294967168 }
   0xe   :  { %16 = sfence }
   0xf   :  { %17 = vsyncpa [#allocation6], 0 }
  0x10   :  { %18 = vsyncpa [#allocation9], 0 }
  0x11   :  { %19 = vsyncpa [#allocation7], 0  ;;  %s869_s26 = smov [#allocation8]   ;;  %s870_s28 = smov [#allocation5]  }
  0x12   :  { %s37_s27 = sshll.u32 %s869_s26, 4  ;;  %s25_s0 = sshll.u32 %s870_s28, 4  ;;  %s38_s27 = int_to_ptr.vmem [resolvable:$true] %s37_s27  ;;  %s916_s0 = int_to_ptr.vmem [resolvable:$true] %s25_s0 }
  0x13   :  { %s772_s7 = scalar_lea.hbm %s1094_s2, 2048 }
  0x14   :  { %p773_p5 = scmp.ne.s32.totalorder %s1094_s2, %s772_s7  ;;  %p776_p6 = scmp.lt.u32.totalorder %s772_s7, %s1094_s2 }
  0x16   :  { %p778_p7 = pnand %p776_p6, %p773_p5 }
  0x18   :  { %781 = shalt.err (!%p778_p7)
}
  0x19   :  { %s782_s12 = scalar_lea.vmem %s38_s27, 2048  ;;  %p787_p9 = scmp.lt.s32.totalorder %s38_s27, %s38_s27 }
  0x1a   :  { %p783_p8 = scmp.ne.s32.totalorder %s38_s27, %s782_s12  ;;  %p788_p10 = scmp.lt.s32.totalorder %s782_s12, %s782_s12 }
  0x1c   :  { %p789_p11 = por %p788_p10, %p787_p9 }
  0x1e   :  { %p790_p12 = pnand %p789_p11, %p783_p8 }
  0x20   :  { %793 = shalt.err (!%p790_p12)
}
  0x21   :  { %s871_s13 = smov 128   ;;  %s872_s14 = smov 8  }
  0x22   :  { %43 = dma.hbm_to_vmem [thread:$0]  %s1094_s2, 2048, %s38_s27, [#allocation9], %s871_s13, %s871_s13, %s872_s14  }
  0x23   :  { %s794_s19 = scalar_lea.hbm %s1093_s1, 1024 }
  0x24   :  { %p795_p13 = scmp.ne.s32.totalorder %s1093_s1, %s794_s19  ;;  %p798_p0 = scmp.lt.u32.totalorder %s794_s19, %s1093_s1 }
  0x26   :  { %p800_p1 = pnand %p798_p0, %p795_p13 }
  0x28   :  { %803 = shalt.err (!%p800_p1)
}
  0x29   :  { %s804_s24 = scalar_lea.vmem %s916_s0, 1024  ;;  %p809_p3 = scmp.lt.s32.totalorder %s916_s0, %s916_s0 }
  0x2a   :  { %p805_p2 = scmp.ne.s32.totalorder %s916_s0, %s804_s24  ;;  %p810_p4 = scmp.lt.s32.totalorder %s804_s24, %s804_s24 }
  0x2c   :  { %p811_p5 = por %p810_p4, %p809_p3 }
  0x2e   :  { %p812_p6 = pnand %p811_p5, %p805_p2 }
  0x30   :  { %815 = shalt.err (!%p812_p6)
}
  0x31   :  { %31 = dma.hbm_to_vmem [thread:$0]  %s1093_s1, 1024, %s916_s0, [#allocation6], %s871_s13, %s871_s13, %s872_s14  }
  0x32   :  { %s873_s26 = smov [#allocation10]   ;;  %s816_s30 = scalar_lea.hbm %s1096_s4, 2048 }
  0x33   :  { %s51_s27 = sshll.u32 %s873_s26, 4  ;;  %p817_p7 = scmp.ne.s32.totalorder %s1096_s4, %s816_s30  ;;  %s52_s27 = int_to_ptr.vmem [resolvable:$true] %s51_s27 }
  0x34   :  { %p820_p8 = scmp.lt.u32.totalorder %s816_s30, %s1096_s4 }
  0x36   :  { %p822_p9 = pnand %p820_p8, %p817_p7 }
  0x38   :  { %825 = shalt.err (!%p822_p9)
}
  0x39   :  { %s826_s11 = scalar_lea.vmem %s52_s27, 2048  ;;  %p831_p11 = scmp.lt.s32.totalorder %s52_s27, %s52_s27 }
  0x3a   :  { %p827_p10 = scmp.ne.s32.totalorder %s52_s27, %s826_s11  ;;  %p832_p12 = scmp.lt.s32.totalorder %s826_s11, %s826_s11 }
  0x3c   :  { %p833_p13 = por %p832_p12, %p831_p11 }
  0x3e   :  { %p834_p0 = pnand %p833_p13, %p827_p10 }
  0x40   :  { %837 = shalt.err (!%p834_p0)
}
  0x41   :  { %57 = dma.hbm_to_vmem [thread:$0]  %s1096_s4, 2048, %s52_s27, [#allocation9], %s871_s13, %s871_s13, %s872_s14  }
  0x42   :  { %862 = dma.done.wait [#allocation6], 1024  }
  0x43   :  { %863 = vsyncadd [#allocation6], 4294966272 }
  0x44   :  { %864 = dma.done.wait [#allocation9], 4096  }
  0x45   :  { %865 = vsyncadd [#allocation9], 4294963200  ;;  %v874_v0 = vmov 0.0|0.0   ;;  %vm875_vm0 = vmmov 0   ;;  %v876_v1 = vmov 0.0   ;;  %s71_s12 = sld [smem:[#allocation4]] }
  0x46   :  { %698 = vmatprep.subr.bf16.mxu0 %v874_v0  ;;  %660 = vmatprep.mubr.msk.f32.mxu0 %vm875_vm0, %v876_v1  ;;  %s537_s15 = sld [smem:[#allocation4 + $0x1]]  ;;  %s969_s16 = sld [smem:[#allocation4 + $0x2]]  ;;  %v262_v2 = vld [vmem:[#allocation8] sm:$0xff]  ;;  %v263_v3 = vld [vmem:[#allocation8 + $0x8] sm:$0xff]  ;;  %v264_v4 = vld [vmem:[#allocation8 + $0x10] sm:$0xff] }
  0x47   :  { %s971_s17 = sld [smem:[#allocation4 + $0x3]]  ;;  %722 = vmatprep.subr.bf16.mxu1 %v874_v0  ;;  %695 = vmatprep.mubr.msk.f32.mxu1 %vm875_vm0, %v876_v1  ;;  %s974_s4 = sld [smem:[#allocation4 + $0x80]]  ;;  %v699_v5 = vpack.c.bf16 %v263_v3, %v262_v2  ;;  %v265_v6 = vld [vmem:[#allocation8 + $0x18] sm:$0xff]  ;;  %v266_v8 = vld [vmem:[#allocation8 + $0x20] sm:$0xff]  ;;  %v267_v9 = vld [vmem:[#allocation8 + $0x28] sm:$0xff] }
  0x48   :  { %s976_s13 = sld [smem:[#allocation4 + $0x81]]  ;;  %s978_s14 = sld [smem:[#allocation4 + $0x82]]  ;;  %v702_v7 = vpack.c.bf16 %v265_v6, %v264_v4  ;;  %v268_v12 = vld [vmem:[#allocation8 + $0x30] sm:$0xff]  ;;  %v269_v13 = vld [vmem:[#allocation8 + $0x38] sm:$0xff]  ;;  %v705_v18 = vpack.c.bf16 %v267_v9, %v266_v8  ;;  %v356_v28 = vld [vmem:[#allocation10] sm:$0xff] }
  0x49   :  { %s980_s18 = sld [smem:[#allocation4 + $0x83]]  ;;  %s982_s19 = sld [smem:[#allocation4 + $0x100]]  ;;  %700 = vmatpush3.bf16.msra.mxu0 %v699_v5  ;;  %v357_v29 = vld [vmem:[#allocation10 + $0x8] sm:$0xff]  ;;  %v358_v30 = vld [vmem:[#allocation10 + $0x10] sm:$0xff]  ;;  %v708_v35 = vpack.c.bf16 %v269_v13, %v268_v12  ;;  %v359_v37 = vld [vmem:[#allocation10 + $0x18] sm:$0xff] }
  0x4a   :  { %s984_s20 = sld [smem:[#allocation4 + $0x101]]  ;;  %s986_s21 = sld [smem:[#allocation4 + $0x102]]  ;;  %701 = vmatprep.subr.bf16.mxu0 %v874_v0  ;;  %v723_v34 = vpack.c.bf16 %v357_v29, %v356_v28  ;;  %v270_v38 = vld [vmem:[#allocation8 + $0x40] sm:$0xff]  ;;  %v271_v39 = vld [vmem:[#allocation8 + $0x48] sm:$0xff]  ;;  %v726_v41 = vpack.c.bf16 %v359_v37, %v358_v30  ;;  %v272_v46 = vld [vmem:[#allocation8 + $0x50] sm:$0xff] }
  0x4b   :  { %s988_s22 = sld [smem:[#allocation4 + $0x103]]  ;;  %s72_s23 = scalar_lea.vmem [#allocation5], %s71_s12  ;;  %v360_v43 = vld [vmem:[#allocation10 + $0x20] sm:$0xff]  ;;  %v361_v44 = vld [vmem:[#allocation10 + $0x28] sm:$0xff]  ;;  %v711_v45 = vpack.c.bf16 %v271_v39, %v270_v38  ;;  %v273_v47 = vld [vmem:[#allocation8 + $0x58] sm:$0xff] }
  0x4c   :  { %v73_v10 = vld [vmem:[%s72_s23] sm:$0x1]  ;;  %s482_s24 = scalar_lea.vmem [#allocation5], %s537_s15  ;;  %s484_s2 = scalar_lea.vmem [#allocation5], %s969_s16  ;;  %724 = vmatpush3.bf16.msra.mxu1 %v723_v34  ;;  %v729_v49 = vpack.c.bf16 %v361_v44, %v360_v43  ;;  %v362_v50 = vld [vmem:[#allocation10 + $0x30] sm:$0xff]  ;;  %v274_v54 = vld [vmem:[#allocation8 + $0x60] sm:$0xff]  ;;  %v714_v59 = vpack.c.bf16 %v273_v47, %v272_v46 }
  0x4d   :  { %v538_v11 = vld [vmem:[%s482_s24 + $0x10] sm:$0x1]  ;;  %v540_v15 = vld [vmem:[%s484_s2 + $0x20] sm:$0x1]  ;;  %s486_s25 = scalar_lea.vmem [#allocation5], %s971_s17  ;;  %s96_s26 = scalar_lea.vmem [#allocation5], %s974_s4  ;;  %703 = vmatpush3.bf16.msra.mxu0 %v702_v7  ;;  %725 = vmatprep.subr.bf16.mxu1 %v874_v0 }
  0x4e   :  { %v79_v14 = vadd.f32 %v538_v11, %v73_v10  ;;  %v542_v16 = vld [vmem:[%s486_s25 + $0x30] sm:$0x1]  ;;  %v97_v17 = vld [vmem:[%s96_s26] sm:$0x1]  ;;  %s489_s27 = scalar_lea.vmem [#allocation5], %s976_s13  ;;  %s491_s28 = scalar_lea.vmem [#allocation5], %s978_s14  ;;  %704 = vmatprep.subr.bf16.mxu0 %v874_v0 }
  0x4f   :  { %v545_v19 = vld [vmem:[%s489_s27 + $0x10] sm:$0x1]  ;;  %v547_v20 = vld [vmem:[%s491_s28 + $0x20] sm:$0x1]  ;;  %s493_s29 = scalar_lea.vmem [#allocation5], %s980_s18  ;;  %s120_s30 = scalar_lea.vmem [#allocation5], %s982_s19 }
  0x50   :  { %v549_v21 = vld [vmem:[%s493_s29 + $0x30] sm:$0x1]  ;;  %v85_v22 = vadd.f32 %v540_v15, %v79_v14  ;;  %v103_v23 = vadd.f32 %v545_v19, %v97_v17  ;;  %v121_v24 = vld [vmem:[%s120_s30] sm:$0x1]  ;;  %s496_s7 = scalar_lea.vmem [#allocation5], %s984_s20  ;;  %s498_s8 = scalar_lea.vmem [#allocation5], %s986_s21  ;;  %727 = vmatpush3.bf16.msra.mxu1 %v726_v41 }
  0x51   :  { %v552_v25 = vld [vmem:[%s496_s7 + $0x10] sm:$0x1]  ;;  %v554_v26 = vld [vmem:[%s498_s8 + $0x20] sm:$0x1]  ;;  %s1001_s9 = sld [smem:[#allocation4 + $0x180]]  ;;  %s500_s10 = scalar_lea.vmem [#allocation5], %s988_s22  ;;  %706 = vmatpush3.bf16.msra.mxu0 %v705_v18  ;;  %728 = vmatprep.subr.bf16.mxu1 %v874_v0 }
  0x52   :  { %v127_v27 = vadd.f32 %v552_v25, %v121_v24  ;;  %v91_v31 = vadd.f32 %v542_v16, %v85_v22  ;;  %v109_v32 = vadd.f32 %v547_v20, %v103_v23  ;;  %v556_v33 = vld [vmem:[%s500_s10 + $0x30] sm:$0x1]  ;;  %s1004_s11 = sld [smem:[#allocation4 + $0x181]]  ;;  %s1006_s1 = sld [smem:[#allocation4 + $0x182]]  ;;  %707 = vmatprep.subr.bf16.mxu0 %v874_v0  ;;  %v363_v51 = vld [vmem:[#allocation10 + $0x38] sm:$0xff]  ;;  %v364_v62 = vld [vmem:[#allocation10 + $0x40] sm:$0xff] }
  0x53   :  { %s1008_s0 = sld [smem:[#allocation4 + $0x183]]  ;;  %s1010_s12 = sld [smem:[#allocation4 + $0x200]]  ;;  %v275_v55 = vld [vmem:[#allocation8 + $0x68] sm:$0xff]  ;;  %v732_v4 = vpack.c.bf16 %v363_v51, %v362_v50  ;;  %v276_v13 = vld [vmem:[#allocation8 + $0x70] sm:$0xff]  ;;  %v277_v14 = vld [vmem:[#allocation8 + $0x78] sm:$0xff] }
  0x54   :  { %v133_v36 = vadd.f32 %v554_v26, %v127_v27  ;;  %92 = vst [vmem:[#allocation2] sm:$0x1] %v91_v31  ;;  %v115_v40 = vadd.f32 %v549_v21, %v109_v32  ;;  %s1013_s15 = sld [smem:[#allocation4 + $0x201]]  ;;  %s1015_s16 = sld [smem:[#allocation4 + $0x202]]  ;;  %730 = vmatpush3.bf16.msra.mxu1 %v729_v49  ;;  %v365_v7 = vld [vmem:[#allocation10 + $0x48] sm:$0xff]  ;;  %v717_v11 = vpack.c.bf16 %v275_v55, %v274_v54  ;;  %v366_v18 = vld [vmem:[#allocation10 + $0x50] sm:$0xff]  ;;  %v449_v49 = vlaneseq }
  0x55   :  { %s1017_s17 = sld [smem:[#allocation4 + $0x203]]  ;;  %s1019_s4 = sld [smem:[#allocation4 + $0x280]]  ;;  %709 = vmatpush3.bf16.msra.mxu0 %v708_v35  ;;  %731 = vmatprep.subr.bf16.mxu1 %v874_v0  ;;  %v735_v17 = vpack.c.bf16 %v365_v7, %v364_v62  ;;  %v367_v19 = vld [vmem:[#allocation10 + $0x58] sm:$0xff]  ;;  %v720_v21 = vpack.c.bf16 %v277_v14, %v276_v13  ;;  %v368_v23 = vld [vmem:[#allocation10 + $0x60] sm:$0xff]  ;;  %v369_v24 = vld [vmem:[#allocation10 + $0x68] sm:$0xff] }
  0x56   :  { %v139_v42 = vadd.f32 %v556_v33, %v133_v36  ;;  %116 = vst [vmem:[#allocation2 + $0x1] sm:$0x1] %v115_v40  ;;  %s1022_s13 = sld [smem:[#allocation4 + $0x281]]  ;;  %s1024_s14 = sld [smem:[#allocation4 + $0x282]]  ;;  %710 = vmatprep.subr.bf16.mxu0 %v874_v0  ;;  %v738_v22 = vpack.c.bf16 %v367_v19, %v366_v18  ;;  %v741_v35 = vpack.c.bf16 %v369_v24, %v368_v23  ;;  %v370_v41 = vld [vmem:[#allocation10 + $0x70] sm:$0xff]  ;;  %v450_v50 = vand.u32 127, %v449_v49 }
  0x57   :  { %s1026_s18 = sld [smem:[#allocation4 + $0x283]]  ;;  %s144_s19 = scalar_lea.vmem [#allocation5], %s1001_s9  ;;  %v592_v44 = vld [vmem:[%s1095_s3] ss:$0 sm:$0xff] }
  0x58   :  { %140 = vst [vmem:[#allocation2 + $0x2] sm:$0x1] %v139_v42  ;;  %v145_v48 = vld [vmem:[%s144_s19] sm:$0x1]  ;;  %s503_s20 = scalar_lea.vmem [#allocation5], %s1004_s11  ;;  %s505_s21 = scalar_lea.vmem [#allocation5], %s1006_s1  ;;  %733 = vmatpush3.bf16.msra.mxu1 %v732_v4 }
  0x59   :  { %v559_v52 = vld [vmem:[%s503_s20 + $0x10] sm:$0x1]  ;;  %v561_v53 = vld [vmem:[%s505_s21 + $0x20] sm:$0x1]  ;;  %s507_s22 = scalar_lea.vmem [#allocation5], %s1008_s0  ;;  %s168_s23 = scalar_lea.vmem [#allocation5], %s1010_s12  ;;  %712 = vmatpush3.bf16.msra.mxu0 %v711_v45  ;;  %734 = vmatprep.subr.bf16.mxu1 %v874_v0 }
  0x5a   :  { %v151_v56 = vadd.f32 %v559_v52, %v145_v48  ;;  %v563_v57 = vld [vmem:[%s507_s22 + $0x30] sm:$0x1]  ;;  %v169_v58 = vld [vmem:[%s168_s23] sm:$0x1]  ;;  %s510_s24 = scalar_lea.vmem [#allocation5], %s1013_s15  ;;  %s512_s2 = scalar_lea.vmem [#allocation5], %s1015_s16  ;;  %713 = vmatprep.subr.bf16.mxu0 %v874_v0 }
  0x5b   :  { %v566_v60 = vld [vmem:[%s510_s24 + $0x10] sm:$0x1]  ;;  %v568_v61 = vld [vmem:[%s512_s2 + $0x20] sm:$0x1]  ;;  %s514_s25 = scalar_lea.vmem [#allocation5], %s1017_s17  ;;  %s192_s26 = scalar_lea.vmem [#allocation5], %s1019_s4 }
  0x5c   :  { %v157_v63 = vadd.f32 %v561_v53, %v151_v56  ;;  %v175_v1 = vadd.f32 %v566_v60, %v169_v58  ;;  %v570_v2 = vld [vmem:[%s514_s25 + $0x30] sm:$0x1]  ;;  %v193_v3 = vld [vmem:[%s192_s26] sm:$0x1]  ;;  %s517_s27 = scalar_lea.vmem [#allocation5], %s1022_s13  ;;  %s519_s28 = scalar_lea.vmem [#allocation5], %s1024_s14  ;;  %736 = vmatpush3.bf16.msra.mxu1 %v735_v17 }
  0x5d   :  { %v573_v5 = vld [vmem:[%s517_s27 + $0x10] sm:$0x1]  ;;  %v575_v6 = vld [vmem:[%s519_s28 + $0x20] sm:$0x1]  ;;  %s1043_s29 = sld [smem:[#allocation4 + $0x300]]  ;;  %s1045_s30 = sld [smem:[#allocation4 + $0x301]]  ;;  %715 = vmatpush3.bf16.msra.mxu0 %v714_v59  ;;  %737 = vmatprep.subr.bf16.mxu1 %v874_v0 }
  0x5e   :  { %v163_v8 = vadd.f32 %v563_v57, %v157_v63  ;;  %v181_v9 = vadd.f32 %v568_v61, %v175_v1  ;;  %v199_v10 = vadd.f32 %v573_v5, %v193_v3  ;;  %s521_s7 = scalar_lea.vmem [#allocation5], %s1026_s18  ;;  %s1048_s8 = sld [smem:[#allocation4 + $0x302]]  ;;  %716 = vmatprep.subr.bf16.mxu0 %v874_v0  ;;  %v371_v42 = vld [vmem:[#allocation10 + $0x78] sm:$0xff]  ;;  %vm451_vm1 = vcmp.lt.s32.totalorder %v450_v50, 16 }
  0x5f   :  { %v577_v12 = vld [vmem:[%s521_s7 + $0x30] sm:$0x1]  ;;  %s1050_s9 = sld [smem:[#allocation4 + $0x303]]  ;;  %s1053_s10 = sld [smem:[#allocation4 + $0x380]]  ;;  %v744_v43 = vpack.c.bf16 %v371_v42, %v370_v41 }
  0x60   :  { %164 = vst [vmem:[#allocation2 + $0x3] sm:$0x1] %v163_v8  ;;  %v187_v15 = vadd.f32 %v570_v2, %v181_v9  ;;  %v205_v16 = vadd.f32 %v575_v6, %v199_v10  ;;  %s1055_s11 = sld [smem:[#allocation4 + $0x381]]  ;;  %s1057_s1 = sld [smem:[#allocation4 + $0x382]]  ;;  %739 = vmatpush3.bf16.msra.mxu1 %v738_v22 }
  0x61   :  { %s1059_s0 = sld [smem:[#allocation4 + $0x383]]  ;;  %718 = vmatpush3.bf16.msra.mxu0 %v717_v11  ;;  %740 = vmatprep.subr.bf16.mxu1 %v874_v0  ;;  %s877_s3 = smov [#allocation11]  }
  0x62   :  { %188 = vst [vmem:[#allocation2 + $0x4] sm:$0x1] %v187_v15  ;;  %v211_v20 = vadd.f32 %v577_v12, %v205_v16  ;;  %719 = vmatprep.subr.bf16.mxu0 %v874_v0  ;;  %s471_s23 = sshll.u32 %s877_s3, 4  ;;  %s472_s23 = int_to_ptr.vmem [resolvable:$true] %s471_s23 }
  0x63   :  { %s216_s12 = scalar_lea.vmem [#allocation5], %s1043_s29  ;;  %s524_s15 = scalar_lea.vmem [#allocation5], %s1045_s30 }
  0x64   :  { %212 = vst [vmem:[#allocation2 + $0x5] sm:$0x1] %v211_v20  ;;  %v217_v25 = vld [vmem:[%s216_s12] sm:$0x1]  ;;  %v580_v26 = vld [vmem:[%s524_s15 + $0x10] sm:$0x1]  ;;  %742 = vmatpush3.bf16.msra.mxu1 %v741_v35  ;;  %p843_p2 = scmp.lt.s32.totalorder %s472_s23, %s472_s23 }
  0x65   :  { %v223_v27 = vadd.f32 %v580_v26, %v217_v25  ;;  %s526_s16 = scalar_lea.vmem [#allocation5], %s1048_s8  ;;  %s528_s17 = scalar_lea.vmem [#allocation5], %s1050_s9  ;;  %721 = vmatpush3.bf16.msra.mxu0 %v720_v21  ;;  %743 = vmatprep.subr.bf16.mxu1 %v874_v0  ;;  %v593_v0 = vld [vmem:[%s1097_s5] ss:$0 sm:$0xff] }
  0x66   :  { %v582_v28 = vld [vmem:[%s526_s16 + $0x20] sm:$0x1]  ;;  %v584_v29 = vld [vmem:[%s528_s17 + $0x30] sm:$0x1]  ;;  %s240_s4 = scalar_lea.vmem [#allocation5], %s1053_s10  ;;  %s531_s13 = scalar_lea.vmem [#allocation5], %s1055_s11 }
  0x67   :  { %v241_v30 = vld [vmem:[%s240_s4] sm:$0x1]  ;;  %v587_v31 = vld [vmem:[%s531_s13 + $0x10] sm:$0x1]  ;;  %v229_v32 = vadd.f32 %v582_v28, %v223_v27  ;;  %s533_s14 = scalar_lea.vmem [#allocation5], %s1057_s1  ;;  %s535_s18 = scalar_lea.vmem [#allocation5], %s1059_s0 }
  0x68   :  { %v247_v33 = vadd.f32 %v587_v31, %v241_v30  ;;  %v589_v34 = vld [vmem:[%s533_s14 + $0x20] sm:$0x1]  ;;  %v591_v36 = vld [vmem:[%s535_s18 + $0x30] sm:$0x1]  ;;  %745 = vmatpush3.bf16.msra.mxu1 %v744_v43  ;;  %s838_s5 = scalar_lea.vmem %s472_s23, 128 }
  0x69   :  { %v235_v37 = vadd.f32 %v584_v29, %v229_v32  ;;  %p839_p1 = scmp.ne.s32.totalorder %s472_s23, %s838_s5  ;;  %p844_p3 = scmp.lt.s32.totalorder %s838_s5, %s838_s5 }
  0x6a   :  { %v253_v38 = vadd.f32 %v589_v34, %v247_v33 }
  0x6b   :  { %236 = vst [vmem:[#allocation2 + $0x6] sm:$0x1] %v235_v37  ;;  %p845_p4 = por %p844_p3, %p843_p2 }
  0x6c   :  { %v259_v39 = vadd.f32 %v591_v36, %v253_v38 }
  0x6d   :  { %p846_p5 = pnand %p845_p4, %p839_p1 }
  0x6e   :  { %260 = vst [vmem:[#allocation2 + $0x7] sm:$0x1] %v259_v39 }
  0x75   :  { %v261_v40 = vld [vmem:[#allocation2] sm:$0xff] }
  0x76   :  { %661 = vmatmul.mubr.f32.vlgmr.msra.gmra.mrb[0].mxu0 %v261_v40 }
 0x149   :  { %v351_v45 = vpop.f32.mrb[0].mxu0 }
 0x14a   :  { %v352_v46 = vadd.f32 %v592_v44, %v351_v45  ;;  %v662_v47 = vpop.f32.mrb[1].mxu0 }
 0x14c   :  { %v355_v48 = vmax.f32 %v352_v46, 0.0 }
 0x14e   :  { %696 = vmatmul.mubr.f32.vlgmr.msra.gmra.mrb[0].mxu1 %v355_v48 }
 0x221   :  { %v445_v51 = vpop.f32.mrb[0].mxu1 }
 0x222   :  { %v446_v52 = vadd.f32 %v593_v0, %v445_v51  ;;  %v697_v53 = vpop.f32.mrb[1].mxu1 }
 0x224   :  { %v452_v54 = vsel %vm451_vm1, %v446_v52, -inf }
 0x225   :  { %453 = vmax.xlane.f32.xlu0 %v452_v54 }
 0x2b2   :  { %v454_v55 = vpop.xlane.xlu0 %453 }
 0x2b3   :  { %v455_v56 = vsub.f32 %v452_v54, %v454_v55 }
 0x2b5   :  { %v456_v57 = vmul.f32 1.442695, %v455_v56 }
 0x2b7   :  { %756 = vpow2.f32 %v456_v57 }
 0x2c1   :  { %v757_v58 = vpop.eup %756 }
 0x2c2   :  { %458 = vadd.xlane.f32.xlu0 %v757_v58 }
 0x34f   :  { %v459_v59 = vpop.xlane.xlu0 %458 }
 0x350   :  { %758 = vlog2.f32 %v459_v59 }
 0x35a   :  { %v759_v60 = vpop.eup %758 }
 0x35b   :  { %v461_v61 = vmul.f32 0.6931472, %v759_v60 }
 0x35d   :  { %v462_v62 = vadd.f32 %v461_v61, %v454_v55 }
 0x35f   :  { %v463_v63 = vsub.f32 %v452_v54, %v462_v62 }
 0x361   :  { %464 = vst [vmem:[#allocation11] sm:$0xff] %v463_v63 }
 0x362   :  { %849 = shalt.err (!%p846_p5)
}
 0x363   :  { %s850_s25 = scalar_lea.hbm %s1098_s6, 128 }
 0x364   :  { %p851_p6 = scmp.ne.s32.totalorder %s1098_s6, %s850_s25  ;;  %p854_p7 = scmp.lt.u32.totalorder %s850_s25, %s1098_s6 }
 0x366   :  { %p856_p8 = pnand %p854_p7, %p851_p6 }
 0x368   :  { %859 = shalt.err (!%p856_p8)
}
 0x369   :  { %474 = dma.vmem_to_hbm [thread:$0]  %s472_s23, 128, %s1098_s6, [#allocation7]  }
 0x36a   :  { %866 = dma.done.wait [#allocation7], 128  }
 0x36b   :  { %867 = vsyncadd [#allocation7], 4294967168 }
 0x36c   :  { %478 = vsyncpa [#allocation6], 1 }
 0x36d   :  { %479 = vsyncpa [#allocation9], 1 }
 0x36e   :  { %480 = vsyncpa [#allocation7], 1 }

</bundles_post_ra>
